<compile_context>
chip_gen: v6e
topology: v6e:2x2x1
jax: 0.10.0
libtpu: 0.0.40
codegen_flags: <defaults>
</compile_context>

<pallas_src>
import functools

import numpy as np

import jax
import jax.numpy as jnp
from jax import lax
from jax.experimental import pallas as pl
from jax.experimental.pallas import tpu as pltpu


def _round_up(a, b):
    return (a + b - 1) // b * b


def _cdiv(a, b):
    return (a + b - 1) // b


_EPI_ROW_BLOCK = 512  # epilogue row-block size (bounds (rb, m) temporaries)


def _triplet_kernel(x_ref, sqc_ref, sqr_ref, tcol_ref, trow_ref,
                    loss_ref, prec_ref, gram_acc,
                    *, margin, m, m_valid):
    k = pl.program_id(0)

    @pl.when(k == 0)
    def _init():
        gram_acc[...] = jnp.zeros_like(gram_acc)

    # Gram partial: G += X_k @ X_k^T  (MXU, f32 accumulation; slabs may be bf16,
    # cast is done in the wrapper so the DMA itself is half-width).
    xk = x_ref[...]                                          # (m, TK)
    gram_acc[...] += lax.dot_general(
        xk, xk,
        dimension_numbers=(((1,), (1,)), ((), ())),
        preferred_element_type=jnp.float32,
    )

    @pl.when(k == pl.num_programs(0) - 1)
    def _epilogue():
        sq_row = sqr_ref[...]                                # (1, m) f32, resident
        t_row = trow_ref[...]                                # (1, m) int32, resident

        def row_block(r0, rb):
            # Batch-hard mining over rows [r0, r0 + rb).
            dist = (sqc_ref[pl.ds(r0, rb), :] + sq_row
                    - 2.0 * gram_acc[pl.ds(r0, rb), :])      # (rb, m)
            same = tcol_ref[pl.ds(r0, rb), :] == t_row       # (rb, m), via broadcast
            if m_valid < m:                                  # trace-time specialization
                col_ok = lax.broadcasted_iota(jnp.int32, (rb, m), 1) < m_valid
                pos_mask = same & col_ok
                neg_mask = (~same) & col_ok
            else:
                pos_mask = same
                neg_mask = ~same
            dist_ap = jnp.max(jnp.where(pos_mask, dist, -jnp.inf),
                              axis=1, keepdims=True)         # (rb, 1)
            dist_an = jnp.min(jnp.where(neg_mask, dist, jnp.inf),
                              axis=1, keepdims=True)         # (rb, 1)
            per = jnp.maximum(dist_ap - dist_an + margin, 0.0)
            hit = (dist_an > dist_ap).astype(jnp.float32)
            if m_valid < m:
                row_ok = (lax.broadcasted_iota(jnp.int32, (rb, 1), 0) + r0
                          < m_valid).astype(jnp.float32)
                per = per * row_ok
                hit = hit * row_ok
            return (jnp.sum(per, axis=0, keepdims=True),      # (1, 1)
                    jnp.sum(hit, axis=0, keepdims=True))      # (1, 1)

        if m <= _EPI_ROW_BLOCK:
            loss_sum, hit_sum = row_block(0, m)
        else:
            rb = _EPI_ROW_BLOCK
            nfull = m // rb

            def body(i, carry):
                ls, hs = carry
                r0 = pl.multiple_of(i * rb, 8)
                bl, bh = row_block(r0, rb)
                return ls + bl, hs + bh

            loss_sum, hit_sum = lax.fori_loop(
                0, nfull, body,
                (jnp.zeros((1, 1), jnp.float32), jnp.zeros((1, 1), jnp.float32)))
            rem = m - nfull * rb
            if rem:
                bl, bh = row_block(nfull * rb, rem)
                loss_sum = loss_sum + bl
                hit_sum = hit_sum + bh

        inv_n = 1.0 / m_valid
        loss_ref[...] = loss_sum * inv_n
        prec_ref[...] = hit_sum * inv_n


def triplet_loss(inputs, targets, margin=0.1, tk=None, use_bf16_mxu=False):
    """inputs: (N, C, H, W) float; targets: (N,) int.  Returns (loss, prec) scalars."""
    m0 = int(inputs.shape[0])
    x = inputs.reshape(m0, -1).astype(jnp.float32)           # torch .view(m, -1)
    d0 = int(x.shape[1])

    # Squared norms in f32 from the un-quantized features (review: norms stay f32,
    # no in-kernel per-step norm accumulation, no (m, m) transpose in the epilogue).
    sq = jnp.sum(x * x, axis=1)                               # (m0,)

    # Sublane-only batch padding (8), not 128: the kernel is HBM-bound and
    # partially-filled MXU tiles are far cheaper than up-to-16x extra DMA bytes.
    m = _round_up(max(m0, 8), 8)

    elem = 2 if use_bf16_mxu else 4
    try:
        vmem_cap = int(pltpu.get_tpu_info().vmem_capacity_bytes)
    except Exception:
        vmem_cap = 128 << 20
    if vmem_cap <= (64 << 20):
        # v7x: 64 MiB/TC -- leave headroom for epilogue temporaries + compiler scratch.
        slab_budget, vmem_req_cap = 44 << 20, 50 << 20
    else:
        # v5e / v6e: 128 MiB -- bigger slabs => fewer grid steps, longer DMA bursts.
        slab_budget, vmem_req_cap = 96 << 20, 100 << 20

    gram_bytes = m * m * 4
    epi_bytes = 6 * min(m, _EPI_ROW_BLOCK) * m * 4            # dist/masks/where temps
    tk_max = max((slab_budget - gram_bytes - epi_bytes) // (2 * m * elem), 128)
    tk_max = max((tk_max // 128) * 128, 128)

    # K tiling: pick the grid length first, then round the tile to one 128-lane
    # sliver, so D-padding stays small; skip the pad entirely when not needed.
    if tk is None:
        kt = max(_cdiv(d0, tk_max), 1)
        tk = _round_up(_cdiv(d0, kt), 128)
    else:
        tk = min(max(128, (int(tk) // 128) * 128), _round_up(d0, 128))
        kt = _cdiv(d0, tk)
    d = kt * tk

    # bf16 cast happens HERE (wrapper), so the kernel DMAs half the bytes.
    x_in = x.astype(jnp.bfloat16) if use_bf16_mxu else x
    if m != m0 or d != d0:
        x_in = jnp.pad(x_in, ((0, m - m0), (0, d - d0)))

    t = targets.astype(jnp.int32)
    sq_p = jnp.pad(sq, (0, m - m0)) if m != m0 else sq
    t_p = jnp.pad(t, (0, m - m0), constant_values=-1) if m != m0 else t

    sq_col = sq_p.reshape(m, 1)
    sq_row = sq_p.reshape(1, m)
    t_col = t_p.reshape(m, 1)
    t_row = t_p.reshape(1, m)

    vmem_bytes = (2 * m * tk * elem + gram_bytes + epi_bytes
                  + 8 * m * 4 + (4 << 20))
    vmem_bytes = int(min(max(vmem_bytes, 32 << 20), vmem_req_cap))

    kernel = functools.partial(
        _triplet_kernel, margin=float(margin), m=m, m_valid=m0)

    loss, prec = pl.pallas_call(
        kernel,
        out_shape=(
            jax.ShapeDtypeStruct((1, 1), jnp.float32),
            jax.ShapeDtypeStruct((1, 1), jnp.float32),
        ),
        grid=(kt,),
        in_specs=[
            pl.BlockSpec((m, tk), lambda k: (0, k)),   # pipelined x K-slabs
            pl.BlockSpec((m, 1), lambda k: (0, 0)),    # ||x_i||^2 (column), resident
            pl.BlockSpec((1, m), lambda k: (0, 0)),    # ||x_j||^2 (row), resident
            pl.BlockSpec((m, 1), lambda k: (0, 0)),    # labels (column), resident
            pl.BlockSpec((1, m), lambda k: (0, 0)),    # labels (row), resident
        ],
        out_specs=(
            pl.BlockSpec((1, 1), lambda k: (0, 0)),
            pl.BlockSpec((1, 1), lambda k: (0, 0)),
        ),
        scratch_shapes=[
            pltpu.VMEM((m, m), jnp.float32),           # Gram accumulator
        ],
        compiler_params=pltpu.CompilerParams(
            dimension_semantics=("arbitrary",),        # K is a reduction axis
            vmem_limit_bytes=vmem_bytes,
        ),
    )(x_in, sq_col, sq_row, t_col, t_row)

    return loss[0, 0], prec[0, 0]


if __name__ == "__main__":
    key = jax.random.PRNGKey(0)
    # NCHW inputs: batch=8, channels=4, H=8, W=16 -> flattened feature dim 512.
    inputs = jax.random.normal(key, (8, 4, 8, 16), dtype=jnp.float32)
    targets = jnp.array([0, 0, 1, 1, 0, 1, 0, 1], dtype=jnp.int32)

    # tk=128 -> D=512 splits into 4 pipelined grid steps (exercises accumulation).
    loss, prec = triplet_loss(inputs, targets, margin=0.1, tk=128)
    jax.block_until_ready((loss, prec))

    # float64 numpy reference (same math as the PyTorch module: no sqrt/clamp).
    xf = np.asarray(inputs, dtype=np.float64).reshape(8, -1)
    tg = np.asarray(targets)
    sq_np = (xf * xf).sum(axis=1, keepdims=True)
    dist_ref = sq_np + sq_np.T - 2.0 * (xf @ xf.T)
    same_np = tg[:, None] == tg[None, :]
    ap = np.where(same_np, dist_ref, -np.inf).max(axis=1)
    an = np.where(same_np, np.inf, dist_ref).min(axis=1)
    loss_ref_v = float(np.maximum(ap - an + 0.1, 0.0).mean())
    prec_ref_v = float((an > ap).astype(np.float64).mean())

    assert np.allclose(float(loss), loss_ref_v, rtol=2e-2, atol=2e-2), (float(loss), loss_ref_v)
    assert np.allclose(float(prec), prec_ref_v, atol=1e-6), (float(prec), prec_ref_v)

    # Auto-tiled path (single grid step for D=512) -- exercises the no-pad fast path.
    loss2, prec2 = triplet_loss(inputs, targets, margin=0.1)
    jax.block_until_ready((loss2, prec2))
    assert np.allclose(float(loss2), loss_ref_v, rtol=2e-2, atol=2e-2), (float(loss2), loss_ref_v)
    assert np.allclose(float(prec2), prec_ref_v, atol=1e-6), (float(prec2), prec_ref_v)

    # bf16 slabs (wrapper-side cast; half the DMA bytes on the mem-bound loop).
    loss_bf16, prec_bf16 = triplet_loss(inputs, targets, margin=0.1, tk=128,
                                        use_bf16_mxu=True)
    jax.block_until_ready((loss_bf16, prec_bf16))
    assert bool(jnp.isfinite(loss_bf16)) and bool(jnp.isfinite(prec_bf16))
    assert np.allclose(float(loss_bf16), loss_ref_v, rtol=0.2, atol=1.0), (float(loss_bf16), loss_ref_v)
    assert np.allclose(float(prec_bf16), prec_ref_v, atol=1e-6), (float(prec_bf16), prec_ref_v)

    print("KERNEL_OK")
</pallas_src>

<mosaic_0001>
module attributes {stable_mosaic.version = 11 : i64} {
  func.func @_triplet_kernel(%arg0: i32, %arg1: memref<8x128xf32, #tpu.memory_space<vmem>>, %arg2: memref<8x1xf32, #tpu.memory_space<vmem>>, %arg3: memref<1x8xf32, #tpu.memory_space<vmem>>, %arg4: memref<8x1xi32, #tpu.memory_space<vmem>>, %arg5: memref<1x8xi32, #tpu.memory_space<vmem>>, %arg6: memref<1x1xf32, #tpu.memory_space<vmem>>, %arg7: memref<1x1xf32, #tpu.memory_space<vmem>>, %arg8: memref<8x8xf32, #tpu.memory_space<vmem>>) attributes {dimension_semantics = [#tpu.dimension_semantics<arbitrary>], iteration_bounds = array<i64: 4>, scalar_prefetch = 0 : i64, scratch_operands = 1 : i64, tpu.core_type = #tpu.core_type<tc>, window_params = [{transform_indices = @transform_0, window_bounds = array<i64: 8, 128>}, {pipeline_mode = #tpu.pipeline_mode<synchronous>, transform_indices = @transform_1, window_bounds = array<i64: 8, 1>}, {pipeline_mode = #tpu.pipeline_mode<synchronous>, transform_indices = @transform_2, window_bounds = array<i64: 1, 8>}, {pipeline_mode = #tpu.pipeline_mode<synchronous>, transform_indices = @transform_3, window_bounds = array<i64: 8, 1>}, {pipeline_mode = #tpu.pipeline_mode<synchronous>, transform_indices = @transform_4, window_bounds = array<i64: 1, 8>}, {pipeline_mode = #tpu.pipeline_mode<synchronous>, transform_indices = @transform_5, window_bounds = array<i64: 1, 1>}, {pipeline_mode = #tpu.pipeline_mode<synchronous>, transform_indices = @transform_6, window_bounds = array<i64: 1, 1>}]} {
    %c0_i32 = arith.constant 0 : i32
    %0 = arith.cmpi eq, %arg0, %c0_i32 : i32
    %1 = arith.extui %0 : i1 to i32
    %c0_i32_0 = arith.constant 0 : i32
    %2 = arith.cmpi ne, %1, %c0_i32_0 : i32
    scf.if %2 {
      %cst_7 = arith.constant 0.000000e+00 : f32
      %11 = vector.broadcast %cst_7 : f32 to vector<8x8xf32>
      %c0_8 = arith.constant 0 : index
      %c0_9 = arith.constant 0 : index
      %12 = vector.load %arg8[%c0_8, %c0_9] : memref<8x8xf32, #tpu.memory_space<vmem>>, vector<8x8xf32>
      tpu.vector_store %arg8[%c0_8, %c0_9], %11 {strides = array<i32>} : memref<8x8xf32, #tpu.memory_space<vmem>>, vector<8x8xf32>,
    } else {
    }
    %c0 = arith.constant 0 : index
    %c0_1 = arith.constant 0 : index
    %3 = vector.load %arg1[%c0, %c0_1] : memref<8x128xf32, #tpu.memory_space<vmem>>, vector<8x128xf32>
    %c0_2 = arith.constant 0 : index
    %c0_3 = arith.constant 0 : index
    %4 = vector.load %arg8[%c0_2, %c0_3] : memref<8x8xf32, #tpu.memory_space<vmem>>, vector<8x8xf32>
    %cst = arith.constant dense<0.000000e+00> : vector<8x8xf32>
    %5 = tpu.matmul %3, %3, %cst {dimension_numbers = #tpu.dot_dimension_numbers<[1], [1], [0], [0], [0, 0, 1, 0], [], []>} : vector<8x128xf32>, vector<8x128xf32>, vector<8x8xf32> -> vector<8x8xf32>
    %6 = arith.addf %4, %5 : vector<8x8xf32>
    %c0_4 = arith.constant 0 : index
    %c0_5 = arith.constant 0 : index
    %7 = vector.load %arg8[%c0_4, %c0_5] : memref<8x8xf32, #tpu.memory_space<vmem>>, vector<8x8xf32>
    tpu.vector_store %arg8[%c0_4, %c0_5], %6 {strides = array<i32>} : memref<8x8xf32, #tpu.memory_space<vmem>>, vector<8x8xf32>,
    %c3_i32 = arith.constant 3 : i32
    %8 = arith.cmpi eq, %arg0, %c3_i32 : i32
    %9 = arith.extui %8 : i1 to i32
    %c0_i32_6 = arith.constant 0 : i32
    %10 = arith.cmpi ne, %9, %c0_i32_6 : i32
    scf.if %10 {
      %c0_7 = arith.constant 0 : index
      %c0_8 = arith.constant 0 : index
      %11 = vector.load %arg3[%c0_7, %c0_8] : memref<1x8xf32, #tpu.memory_space<vmem>>, vector<1x8xf32>
      %c0_9 = arith.constant 0 : index
      %c0_10 = arith.constant 0 : index
      %12 = vector.load %arg5[%c0_9, %c0_10] : memref<1x8xi32, #tpu.memory_space<vmem>>, vector<1x8xi32>
      %c0_11 = arith.constant 0 : index
      %c0_12 = arith.constant 0 : index
      %13 = vector.load %arg2[%c0_11, %c0_12] : memref<8x1xf32, #tpu.memory_space<vmem>>, vector<8x1xf32>
      %14 = vector.broadcast %13 : vector<8x1xf32> to vector<8x8xf32>
      %15 = vector.broadcast %11 : vector<1x8xf32> to vector<8x8xf32>
      %16 = arith.addf %14, %15 : vector<8x8xf32>
      %c0_13 = arith.constant 0 : index
      %c0_14 = arith.constant 0 : index
      %17 = vector.load %arg8[%c0_13, %c0_14] : memref<8x8xf32, #tpu.memory_space<vmem>>, vector<8x8xf32>
      %cst_15 = arith.constant 2.000000e+00 : f32
      %18 = vector.broadcast %cst_15 : f32 to vector<8x8xf32>
      %19 = arith.mulf %18, %17 : vector<8x8xf32>
      %20 = arith.subf %16, %19 : vector<8x8xf32>
      %c0_16 = arith.constant 0 : index
      %c0_17 = arith.constant 0 : index
      %21 = vector.load %arg4[%c0_16, %c0_17] : memref<8x1xi32, #tpu.memory_space<vmem>>, vector<8x1xi32>
      %22 = vector.broadcast %21 : vector<8x1xi32> to vector<8x8xi32>
      %23 = vector.broadcast %12 : vector<1x8xi32> to vector<8x8xi32>
      %24 = arith.cmpi eq, %22, %23 : vector<8x8xi32>
      %cst_18 = arith.constant dense<true> : vector<8x8xi1>
      %25 = arith.xori %24, %cst_18 : vector<8x8xi1>
      %cst_19 = arith.constant 0xFF800000 : f32
      %26 = vector.broadcast %cst_19 : f32 to vector<8x8xf32>
      %27 = arith.select %24, %20, %26 : vector<8x8xi1>, vector<8x8xf32>
      %cst_20 = arith.constant dense<0xFF800000> : vector<8xf32>
      %28 = vector.multi_reduction <maximumf>, %27, %cst_20 [1] : vector<8x8xf32> to vector<8xf32>
      %29 = vector.shape_cast %28 : vector<8xf32> to vector<8x1xf32>
      %cst_21 = arith.constant 0x7F800000 : f32
      %30 = vector.broadcast %cst_21 : f32 to vector<8x8xf32>
      %31 = arith.select %25, %20, %30 : vector<8x8xi1>, vector<8x8xf32>
      %cst_22 = arith.constant dense<0x7F800000> : vector<8xf32>
      %32 = vector.multi_reduction <minimumf>, %31, %cst_22 [1] : vector<8x8xf32> to vector<8xf32>
      %33 = vector.shape_cast %32 : vector<8xf32> to vector<8x1xf32>
      %34 = arith.subf %29, %33 : vector<8x1xf32>
      %cst_23 = arith.constant 1.000000e-01 : f32
      %35 = vector.broadcast %cst_23 : f32 to vector<8x1xf32>
      %36 = arith.addf %34, %35 : vector<8x1xf32>
      %cst_24 = arith.constant 0.000000e+00 : f32
      %37 = vector.broadcast %cst_24 : f32 to vector<8x1xf32>
      %38 = arith.maximumf %36, %37 : vector<8x1xf32>
      %39 = arith.cmpf ogt, %33, %29 : vector<8x1xf32>
      %40 = arith.extui %39 : vector<8x1xi1> to vector<8x1xi32>
      %41 = arith.sitofp %40 : vector<8x1xi32> to vector<8x1xf32>
      %cst_25 = arith.constant dense<0.000000e+00> : vector<1xf32>
      %42 = vector.multi_reduction <add>, %38, %cst_25 [0] : vector<8x1xf32> to vector<1xf32>
      %43 = vector.shape_cast %42 : vector<1xf32> to vector<1x1xf32>
      %cst_26 = arith.constant dense<0.000000e+00> : vector<1xf32>
      %44 = vector.multi_reduction <add>, %41, %cst_26 [0] : vector<8x1xf32> to vector<1xf32>
      %45 = vector.shape_cast %44 : vector<1xf32> to vector<1x1xf32>
      %cst_27 = arith.constant 1.250000e-01 : f32
      %46 = vector.broadcast %cst_27 : f32 to vector<1x1xf32>
      %47 = arith.mulf %43, %46 : vector<1x1xf32>
      %c0_28 = arith.constant 0 : index
      %c0_29 = arith.constant 0 : index
      %48 = vector.load %arg6[%c0_28, %c0_29] : memref<1x1xf32, #tpu.memory_space<vmem>>, vector<1x1xf32>
      tpu.vector_store %arg6[%c0_28, %c0_29], %47 {strides = array<i32>} : memref<1x1xf32, #tpu.memory_space<vmem>>, vector<1x1xf32>,
      %cst_30 = arith.constant 1.250000e-01 : f32
      %49 = vector.broadcast %cst_30 : f32 to vector<1x1xf32>
      %50 = arith.mulf %45, %49 : vector<1x1xf32>
      %c0_31 = arith.constant 0 : index
      %c0_32 = arith.constant 0 : index
      %51 = vector.load %arg7[%c0_31, %c0_32] : memref<1x1xf32, #tpu.memory_space<vmem>>, vector<1x1xf32>
      tpu.vector_store %arg7[%c0_31, %c0_32], %50 {strides = array<i32>} : memref<1x1xf32, #tpu.memory_space<vmem>>, vector<1x1xf32>,
    } else {
    }
    return
  }
  func.func @transform_0(%arg0: i32) -> (i32, i32) {
    %c0_i32 = arith.constant 0 : i32
    %c0_i32_0 = arith.constant 0 : i32
    return %c0_i32, %arg0 : i32, i32
  }
  func.func @transform_1(%arg0: i32) -> (i32, i32) {
    %c0_i32 = arith.constant 0 : i32
    %c0_i32_0 = arith.constant 0 : i32
    %c0_i32_1 = arith.constant 0 : i32
    return %c0_i32, %c0_i32_0 : i32, i32
  }
  func.func @transform_2(%arg0: i32) -> (i32, i32) {
    %c0_i32 = arith.constant 0 : i32
    %c0_i32_0 = arith.constant 0 : i32
    %c0_i32_1 = arith.constant 0 : i32
    return %c0_i32, %c0_i32_0 : i32, i32
  }
  func.func @transform_3(%arg0: i32) -> (i32, i32) {
    %c0_i32 = arith.constant 0 : i32
    %c0_i32_0 = arith.constant 0 : i32
    %c0_i32_1 = arith.constant 0 : i32
    return %c0_i32, %c0_i32_0 : i32, i32
  }
  func.func @transform_4(%arg0: i32) -> (i32, i32) {
    %c0_i32 = arith.constant 0 : i32
    %c0_i32_0 = arith.constant 0 : i32
    %c0_i32_1 = arith.constant 0 : i32
    return %c0_i32, %c0_i32_0 : i32, i32
  }
  func.func @transform_5(%arg0: i32) -> (i32, i32) {
    %c0_i32 = arith.constant 0 : i32
    %c0_i32_0 = arith.constant 0 : i32
    %c0_i32_1 = arith.constant 0 : i32
    return %c0_i32, %c0_i32_0 : i32, i32
  }
  func.func @transform_6(%arg0: i32) -> (i32, i32) {
    %c0_i32 = arith.constant 0 : i32
    %c0_i32_0 = arith.constant 0 : i32
    %c0_i32_1 = arith.constant 0 : i32
    return %c0_i32, %c0_i32_0 : i32, i32
  }
}

</mosaic_0001>

<bundles_post_ra>
// kernel: tpu_custom_call.1
= control target key start
LH: loop header
LB: loop body
LE: loop exit
PB: predicated region body
PF: predicated region fallthrough
CT: control target
= control target key end

     0   :  { %12 = vsyncpa [#allocation4], 0  ;;  %s861_s0 = inlined_call_operand.hbm [shape: f32[8,512], index: 0, kind: input, shape index: {}]   ;;  %s862_s1 = inlined_call_operand.vmem [shape: f32[8,1], index: 1, kind: input, shape index: {}]   ;;  %s863_s2 = inlined_call_operand.vmem [shape: f32[1,8], index: 2, kind: input, shape index: {}]   ;;  %s864_s3 = inlined_call_operand.vmem [shape: s32[8,1], index: 3, kind: input, shape index: {}]   ;;  %s865_s4 = inlined_call_operand.vmem [shape: s32[1,8], index: 4, kind: input, shape index: {}]   ;;  %s866_s5 = inlined_call_operand.hbm [shape: f32[1,1], index: 5, kind: output, shape index: {0}]   ;;  %s867_s6 = inlined_call_operand.hbm [shape: f32[1,1], index: 6, kind: output, shape index: {1}]  }
   0x1   :  { %14 = vsyncpa [#allocation4 + $0x1], 0 }
   0x2   :  { %15 = vsyncpa [#allocation5], 0 }
   0x3   :  { %16 = vsyncpa [#allocation8], 0  ;;  %s726_s21 = smov 0   ;;  %s728_s22 = smov 0  }
   0x4   :  { %s730_s23 = smov 0   ;;  %s732_s24 = smov 0  }
   0x5 LB: > { %s745_s25 = sadd.s32 4294967295, %s680_s24   ;;  %s748_s26 = sadd.s32 1, %s680_s24   ;;  %s680_s24 = sphi %s732_s24, %s877_s24   ;;  %s676_s23 = sphi %s730_s23, %s876_s23   ;;  %s672_s22 = sphi %s728_s22, %s875_s22   ;;  %s668_s21 = sphi %s726_s21, %s874_s21  }
   0x6   : > { %s26_s27 = ssub.s32 %s680_s24, %s748_s26  ;;  %s29_s28 = sadd.s32 1, %s676_s23 }
   0x7   : > { %p27_p0 = scmp.eq.s32.totalorder %s26_s27, 0  ;;  %p36_p1 = scmp.ne.s32.totalorder %s676_s23, %s672_s22 }
   0x8   : > { %p37_p2 = scmp.eq.s32.totalorder %s680_s24, 0  ;;  %p42_p3 = scmp.ne.s32.totalorder %s672_s22, %s668_s21 }
   0x9   : > { %s758_s29 = scalar_select %p27_p0, %s676_s23, %s29_s28  }
   0xa   : > { %p38_p4 = por %p37_p2, %p36_p1  ;;  %p43_p5 = scmp.eq.s32.totalorder %s745_s25, 0 }
   0xb   : > { %p516_p6 = scmp.lt.s32.totalorder %s680_s24, 4  ;;  %s204_s7 = sand.u32 1, %s676_s23  }
   0xc   : > { %p762_p7 = por %p43_p5, %p42_p3  ;;  %s480_s8 = sshll.u32 %s204_s7, 3 }
   0xd   : > { %s481_s9 = sshll.u32 %s680_s24, 7  ;;  %s208_s13 = scalar_lea.vmem [#allocation3], %s480_s8 }
   0xe   : > { %s869_s30 = scalar_select %p762_p7, 1, 0 }
   0xf   : > { %s771_s12 = scalar_lea.hbm %s861_s0, %s481_s9  ;;  %s215_s14 = sshll.u32 %s208_s13, 4  ;;  %s773_s14 = int_to_ptr.vmem [resolvable:$true] %s215_s14 }
  0x10   : > { %p775_p8 = pnand %p516_p6, %p38_p4  ;;  %s205_s16 = scalar_lea.sflag [#allocation4], %s204_s7 }
  0x11   : > { %s562_s17 = scalar_lea.hbm %s771_s12, 128  ;;  %s567_s20 = scalar_lea.hbm %s861_s0, 512 }
  0x12   : > { %p563_p11 = scmp.ne.s32.totalorder %s771_s12, %s562_s17  ;;  %p564_p12 = pneg %p775_p8 }
  0x13   : > { %p568_p1 = scmp.lt.s32.totalorder %s771_s12, %s861_s0  ;;  %p569_p2 = scmp.lt.s32.totalorder %s567_s20, %s562_s17 }
  0x14   : > { %p565_p13 = pnand %p564_p12, %p563_p11 }
  0x15   : > { %p570_p3 = por %p569_p2, %p568_p1 }
  0x16   : > { %p566_p0 = pneg %p565_p13 }
  0x18   : > { %p571_p4 = pnand %p570_p3, %p566_p0 }
  0x1a   : > { %574 = shalt.err (!%p571_p4)
}
  0x1b   : > { %s575_s28 = scalar_lea.vmem %s773_s14, 128  ;;  %s682_s7 = smov [#allocation3]  }
  0x1c   : > { %p576_p5 = scmp.ne.s32.totalorder %s773_s14, %s575_s28  ;;  %s580_s8 = sshll.u32 %s682_s7, 4  ;;  %s581_s8 = int_to_ptr.vmem [resolvable:$false] %s580_s8 }
  0x1d   : > { %s582_s9 = scalar_lea.vmem %s581_s8, 256  ;;  %p583_p13 = scmp.lt.s32.totalorder %s773_s14, %s581_s8 }
  0x1e   : > { %p578_p6 = pnand %p576_p5, %p564_p12  ;;  %p584_p9 = scmp.lt.s32.totalorder %s582_s9, %s575_s28 }
  0x20   : > { %p579_p11 = pneg %p578_p6  ;;  %p585_p10 = por %p584_p9, %p583_p13 }
  0x22   : > { %p586_p7 = pnand %p585_p10, %p579_p11 }
  0x24   : > { %589 = shalt.err (!%p586_p7)
}
  0x25   : > { %515 = dma.hbm_to_vmem [thread:$0]  (!%p775_p8), %s771_s12, 128, %s773_s14, %s205_s16  }
  0x26   : > { %p871_p0 = scmp.lt.s32.totalorder %s680_s24, 5  ;;  %p872_p1 = scmp.ge.s32.totalorder %s680_s24, 1 }
  0x28   : > { %p221_p12 = pnand %p872_p1, %p871_p0 }
  0x29   : > { %s226_s10 = sand.u32 (!%p221_p12), 1, %s672_s22   ;;  %p873_p9 = scmp.ne.s32.totalorder (!%p221_p12), %s869_s30, 0 }
  0x2a   : > { %224 = sbr.rel (%p221_p12) target bundleno = 582 (0x246), region = 40  ;;  %s483_s11 = sshll.u32 (!%p221_p12), %s226_s10, 3 }
  0x2b   : > { %s227_s13 = scalar_lea.sflag (!%p221_p12), [#allocation4], %s226_s10  ;;  %s230_s17 = scalar_lea.vmem (!%p221_p12), [#allocation3], %s483_s11 }
  0x2f   : > { %655 = dma.done.wait (%p873_p9), %s227_s13, 128  }
  0x30   : > { %657 = vsyncadd (%p873_p9), %s227_s13, 4294967168  ;;  %p484_p7 = scmp.ne.s32.totalorder %s745_s25, 0 }
  0x32   : > { %257 = sbr.rel (%p484_p7) target bundleno = 57 (0x39), region = 48 }
  0x37   : > { %vm258_vm0 = vcmask 64512   ;;  %v683_v0 = vmov 0.0  }
  0x38   : > { %259 = vst.msk [vmem:[#allocation2] sm:$0xff] %vm258_vm0, %v683_v0 }
  0x39 PF: > { %v260_v1 = vld [vmem:[%s230_s17] sm:$0xff]  ;;  %v684_v2 = vmov 0.0   ;;  %vm685_vm1 = vmmov 0   ;;  %vm333_vm2 = vcmask 64512   ;;  %p485_p8 = scmp.ne.s32.totalorder %s745_s25, 3 }
  0x3a   : > { %497 = vmatprep.subr.mxu0 %v684_v2  ;;  %499 = vmatprep.mubr.msk.f32.mxu0 %vm685_vm1, %v684_v2 }
  0x3b   : > { %498 = vmatpush3.xpose.msra.mxu0 %v260_v1 }
  0x3e   : > { %500 = vmatmul.mubr.f32.vlgmr.msra.gmra.mxu0 %v260_v1 }
  0x3f   : > { %v261_v3 = vld [vmem:[#allocation2] sm:$0xff] }
  0xfd   : > { %338 = sbr.rel (%p485_p8) target bundleno = 554 (0x22a), region = 52 }
  0xfe   : > { %v328_v4 = vpop.f32.mrf.mxu0 }
  0xff   : > { %v332_v5 = vadd.f32 %v328_v4, %v261_v3 }
 0x100   : > { %v501_v6 = vpop.f32.mrf.mxu0 }
 0x101   : > { %334 = vst.msk [vmem:[#allocation2] sm:$0xff] %vm333_vm2, %v332_v5 }
 0x102   : > { %v341_v7 = vld [vmem:[%s862_s1] sm:$0xff]  ;;  %v686_v8 = vmov 0   ;;  %vm687_vm4 = vmmov 1   ;;  %v688_v25 = vmov 0.0   ;;  %vm394_vm7 = vcmask 0  }
 0x103   : > { %561 = vset.pattern.permute.xlu0 %v686_v8  ;;  %v357_v9 = vld [vmem:[%s864_s3] sm:$0xff] }
 0x104   : > { %344 = vperm.xlu0 %561, %v341_v7   ;;  %v486_v11 = vld [vmem:[%s863_s2] ss:$0 sm:$0xff] }
 0x105   : > { %v487_v15 = vld [vmem:[%s865_s4] ss:$0 sm:$0xff] }
 0x108   : > { %359 = vperm.xlu0 %561, %v357_v9   ;;  %v354_v10 = vld [vmem:[#allocation2] sm:$0xff] }
 0x109   : > { %v355_v12 = vmul.f32 2.0, %v354_v10 }
 0x17f   : > { %v345_v13 = vpop.permute.xlu0 %344 }
 0x180   : > { %v353_v14 = vadd.f32 %v486_v11, %v345_v13 }
 0x182   : > { %v356_v16 = vsub.f32 %v353_v14, %v355_v12 }
 0x183   : > { %v360_v17 = vpop.permute.xlu0 %359 }
 0x184   : > { %vm365_vm3 = vcmp.eq.s32.totalorder %v360_v17, %v487_v15 }
 0x185   : > { %vm366_vm5 = vmxor %vm365_vm3, %vm687_vm4  ;;  %v367_v18 = vsel %vm365_vm3, %v356_v16, -inf }
 0x186   : > { %v368_v19 = vsel %vm333_vm2, %v367_v18, -inf  ;;  %v371_v20 = vsel %vm366_vm5, %v356_v16, inf }
 0x187   : > { %369 = vmax.xlane.f32.xlu1 %v368_v19  ;;  %v372_v21 = vsel %vm333_vm2, %v371_v20, inf }
 0x18b   : > { %373 = vmin.xlane.f32.xlu1 %v372_v21 }
 0x210   : > { %v370_v22 = vpop.xlane.xlu1 %369 }
 0x214   : > { %v374_v23 = vpop.xlane.xlu1 %373 }
 0x215   : > { %v375_v24 = vsub.f32 %v370_v22, %v374_v23  ;;  %vm378_vm6 = vcmp.gt.f32.partialorder %v374_v23, %v370_v22 }
 0x216   : > { %v488_v26 = vsel %vm378_vm6, 1.0, %v688_v25 }
 0x217   : > { %v376_v27 = vadd.f32 0.1, %v375_v24  ;;  %v387_v28 = vrot.slane %v488_v26, 4 }
 0x219   : > { %v377_v29 = vmax.f32 %v376_v27, 0.0  ;;  %v388_v30 = vadd.f32 %v488_v26, %v387_v28 }
 0x21b   : > { %v381_v31 = vrot.slane %v377_v29, 4  ;;  %v389_v32 = vrot.slane %v388_v30, 2 }
 0x21d   : > { %v382_v33 = vadd.f32 %v381_v31, %v377_v29  ;;  %v390_v34 = vadd.f32 %v389_v32, %v388_v30 }
 0x21f   : > { %v383_v35 = vrot.slane %v382_v33, 2  ;;  %v391_v36 = vrot.slane %v390_v34, 1 }
 0x221   : > { %v384_v37 = vadd.f32 %v383_v35, %v382_v33  ;;  %v392_v38 = vadd.f32 %v391_v36, %v390_v34 }
 0x223   : > { %v385_v39 = vrot.slane %v384_v37, 1  ;;  %v396_v40 = vmul.f32 0.125, %v392_v38 }
 0x225   : > { %v386_v41 = vadd.f32 %v385_v39, %v384_v37  ;;  %397 = vst.msk [vmem:[#allocation7] sm:$0x1] %vm394_vm7, %v396_v40 }
 0x227   : > { %v393_v42 = vmul.f32 0.125, %v386_v41 }
 0x229   : > { %395 = vst.msk [vmem:[#allocation6] sm:$0x1] %vm394_vm7, %v393_v42 }
 0x22a PF: > { %p517_p10 = scmp.eq.s32.totalorder %s745_s25, 3  ;;  %s689_s20 = smov [#allocation6]  }
 0x22b   : > { %s405_s21 = sshll.u32 %s689_s20, 4  ;;  %s690_s27 = smov [#allocation7]   ;;  %s406_s21 = int_to_ptr.vmem [resolvable:$true] %s405_s21 }
 0x22c   : > { %s416_s28 = sshll.u32 %s690_s27, 4  ;;  %s590_s7 = scalar_lea.vmem %s406_s21, 16  ;;  %s417_s28 = int_to_ptr.vmem [resolvable:$true] %s416_s28 }
 0x22d   : > { %p591_p2 = scmp.ne.s32.totalorder %s406_s21, %s590_s7  ;;  %s596_s8 = scalar_lea.vmem %s406_s21, 32 }
 0x22e   : > { %p597_p5 = scmp.lt.s32.totalorder %s406_s21, %s406_s21  ;;  %p598_p6 = scmp.lt.s32.totalorder %s596_s8, %s590_s7 }
 0x22f   : > { %p592_p3 = pnand %p591_p2, %p517_p10 }
 0x230   : > { %p599_p11 = por %p598_p6, %p597_p5 }
 0x231   : > { %p593_p4 = pneg %p592_p3 }
 0x233   : > { %p600_p13 = pnand %p599_p11, %p593_p4 }
 0x235   : > { %603 = shalt.err (!%p600_p13)
}
 0x236   : > { %505 = dma.vmem_to_hbm [thread:$0]  (%p517_p10), %s406_s21, 16, %s866_s5, [#allocation5]  }
 0x237   : > { %s614_s11 = scalar_lea.vmem %s417_s28, 16  ;;  %s620_s13 = scalar_lea.vmem %s417_s28, 32 }
 0x238   : > { %p615_p0 = scmp.ne.s32.totalorder %s417_s28, %s614_s11  ;;  %p621_p9 = scmp.lt.s32.totalorder %s417_s28, %s417_s28 }
 0x239   : > { %p622_p7 = scmp.lt.s32.totalorder %s620_s13, %s614_s11 }
 0x23a   : > { %p616_p1 = pnand %p615_p0, %p517_p10 }
 0x23b   : > { %p623_p8 = por %p622_p7, %p621_p9 }
 0x23c   : > { %p617_p12 = pneg %p616_p1 }
 0x23e   : > { %p624_p2 = pnand %p623_p8, %p617_p12 }
 0x240   : > { %627 = shalt.err (!%p624_p2)
}
 0x241   : > { %507 = dma.vmem_to_hbm [thread:$0]  (%p517_p10), %s417_s28, 16, %s867_s6, [#allocation8]  }
 0x242   : > { %659 = dma.done.wait (%p517_p10), [#allocation5], 16  }
 0x243   : > { %661 = vsyncadd (%p517_p10), [#allocation5], 4294967280 }
 0x244   : > { %663 = dma.done.wait (%p517_p10), [#allocation8], 16  }
 0x245   : > { %665 = vsyncadd (%p517_p10), [#allocation8], 4294967280 }
 0x246 PF: > { %p19_p3 = scmp.ge.s32.totalorder %s748_s26, 6   ;;  %s874_s21 = smov %s672_s22 }
 0x247   : > { %s875_s22 = smov %s676_s23  ;;  %s876_s23 = smov %s758_s29 }
 0x248   : > { %s877_s24 = smov %s748_s26  ;;  %21 = sbr.rel (!%p19_p3) target bundleno = 5 (0x5), region = 93 }
 0x24d   :  { %433 = vsyncpa [#allocation4], 1 }
 0x24e   :  { %435 = vsyncpa [#allocation4 + $0x1], 1 }
 0x24f   :  { %436 = vsyncpa [#allocation5], 1 }
 0x250   :  { %438 = vsyncpa [#allocation5 + $0x1], 1 }
 0x251   :  { %439 = vsyncpa [#allocation8], 1 }

</bundles_post_ra>
